<compile_context>
chip_gen: v6e
topology: v6e:2x2x1
jax: 0.10.0
libtpu: 0.0.40
codegen_flags: <defaults>
</compile_context>

<pallas_src>
import jax
import jax.numpy as jnp
from jax.experimental import pallas as pl
from jax.experimental.pallas import tpu as pltpu


# ----------------------------- Pallas kernel --------------------------------
def actor_kernel(
    sig_ref, act_ref, h_ref,        # signal [B,S] f32, actions [B,Na] f32, hidden [B,H] f32
    wi_sig_ref, wi_act_ref,         # fused input->hidden weights, split by rows: [S,3H], [Na,3H] bf16
    wh_ref,                         # fused hidden->hidden weights [H,3H] bf16
    b_ref,                          # packed biases [2, 3H] f32:
                                    #   row 0 = [b_ir+b_hr | b_iz+b_hz | b_in]
                                    #   row 1 = [   0      |    0      | b_hn]
    wp_ref, bp_ref,                 # policy weight [H,A] bf16, bias [1,A] f32
    probs_ref, h_out_ref,           # outputs: action probs [B,A] f32, new hidden [B,H] f32
):
    H = h_ref.shape[1]

    h_f32 = h_ref[...]                                   # keep f32 copy for the blend
    sig = sig_ref[...].astype(wi_sig_ref.dtype)          # bf16 MXU inputs
    act = act_ref[...].astype(wi_act_ref.dtype)
    h_b = h_f32.astype(wh_ref.dtype)

    # --- fused GRUCell gates (PyTorch semantics), f32 accumulation ---
    gi = (
        jnp.dot(sig, wi_sig_ref[...], preferred_element_type=jnp.float32)
        + jnp.dot(act, wi_act_ref[...], preferred_element_type=jnp.float32)
        + b_ref[0:1, :]                                  # includes pre-summed r/z biases + b_in
    )                                                    # [B, 3H]
    gh = jnp.dot(h_b, wh_ref[...], preferred_element_type=jnp.float32)  # [B, 3H]

    b_hn = b_ref[1:2, 2 * H:]                            # [1, H]

    r = jax.nn.sigmoid(gi[:, :H] + gh[:, :H])
    z = jax.nn.sigmoid(gi[:, H:2 * H] + gh[:, H:2 * H])
    n = jnp.tanh(gi[:, 2 * H:] + r * (gh[:, 2 * H:] + b_hn))
    h_new = (1.0 - z) * n + z * h_f32                    # f32

    # --- policy head: Linear + softmax over dim=1 (feature/lane axis) ---
    logits = jnp.dot(h_new.astype(wp_ref.dtype), wp_ref[...],
                     preferred_element_type=jnp.float32) + bp_ref[...]
    m = jnp.max(logits, axis=-1, keepdims=True)
    e = jnp.exp(logits - m)
    inv = pl.reciprocal(jnp.sum(e, axis=-1, keepdims=True), approx=True)
    probs = e * inv

    probs_ref[...] = probs.astype(probs_ref.dtype)
    h_out_ref[...] = h_new.astype(h_out_ref.dtype)


# ------------------------------- wrapper -------------------------------------
def decentralized_actor_forward(signal, actions, hidden, params):
    """signal: [B, S], actions: [B, num_agents], hidden: [B, H].
    Returns (action_probs [B, A], new_hidden [B, H])."""
    B = signal.shape[0]
    H = hidden.shape[1]
    A = params["wp"].shape[1]

    args = (
        signal.astype(jnp.float32),
        actions.astype(jnp.float32),
        hidden.astype(jnp.float32),
        params["wi_sig"], params["wi_act"], params["wh"],
        params["b"], params["wp"], params["bp"],
    )

    vmem_spec = pl.BlockSpec(memory_space=pltpu.MemorySpace.VMEM)
    probs, h_new = pl.pallas_call(
        actor_kernel,
        out_shape=(
            jax.ShapeDtypeStruct((B, A), jnp.float32),
            jax.ShapeDtypeStruct((B, H), jnp.float32),
        ),
        in_specs=[vmem_spec] * len(args),
        out_specs=(vmem_spec, vmem_spec),
    )(*args)
    return probs, h_new


# --------------------------- parameter creation -------------------------------
def init_params(key, signal_dim, num_agents, hidden_size, action_size):
    """Deterministic init, PyTorch-style uniform(-1/sqrt(H), 1/sqrt(H)),
    then fused/packed into the kernel layout."""
    input_size = signal_dim + num_agents
    ks = jax.random.split(key, 14)
    bound = 1.0 / jnp.sqrt(jnp.float32(hidden_size))

    def u(k, shape):
        return jax.random.uniform(k, shape, jnp.float32, -bound, bound)

    # individual PyTorch-style parameters (weights stored pre-transposed: [in, out])
    wir, wiz, win_ = u(ks[0], (input_size, hidden_size)), u(ks[1], (input_size, hidden_size)), u(ks[2], (input_size, hidden_size))
    whr, whz, whn = u(ks[3], (hidden_size, hidden_size)), u(ks[4], (hidden_size, hidden_size)), u(ks[5], (hidden_size, hidden_size))
    bir, biz, bin_ = u(ks[6], (1, hidden_size)), u(ks[7], (1, hidden_size)), u(ks[8], (1, hidden_size))
    bhr, bhz, bhn = u(ks[9], (1, hidden_size)), u(ks[10], (1, hidden_size)), u(ks[11], (1, hidden_size))
    wp = u(ks[12], (hidden_size, action_size))
    bp = u(ks[13], (1, action_size))

    # fuse gates along the output axis: [D, 3H] / [H, 3H]
    wi = jnp.concatenate([wir, wiz, win_], axis=1)
    wh = jnp.concatenate([whr, whz, whn], axis=1)

    # pre-sum the r/z biases; b_hn must stay separate (r * (h@W_hn + b_hn))
    b_row0 = jnp.concatenate([bir + bhr, biz + bhz, bin_], axis=1)            # [1, 3H]
    b_row1 = jnp.concatenate([jnp.zeros((1, 2 * hidden_size), jnp.float32), bhn], axis=1)
    b = jnp.concatenate([b_row0, b_row1], axis=0)                             # [2, 3H]

    return {
        # input weight pre-split by rows so the kernel consumes signal/actions
        # directly (no wrapper-side concat of the activations)
        "wi_sig": wi[:signal_dim, :].astype(jnp.bfloat16),   # [S,  3H]
        "wi_act": wi[signal_dim:, :].astype(jnp.bfloat16),   # [Na, 3H]
        "wh": wh.astype(jnp.bfloat16),                       # [H,  3H]
        "b": b,                                              # [2,  3H] f32
        "wp": wp.astype(jnp.bfloat16),                       # [H,  A]
        "bp": bp,                                            # [1,  A] f32
    }


def init_hidden(batch, hidden_size):
    # matches DecentralizedActor.init_hidden(): zeros(1, hidden_size), batched here
    return jnp.zeros((batch, hidden_size), jnp.float32)


# --------------------------- pure-JAX reference --------------------------------
def reference_forward(signal, actions, hidden, params, hidden_size):
    """Same mixed-precision path as the kernel, in plain JAX (for validation)."""
    sig = signal.astype(jnp.bfloat16)
    act = actions.astype(jnp.bfloat16)
    h_f32 = hidden.astype(jnp.float32)
    h_b = h_f32.astype(jnp.bfloat16)
    H = hidden_size

    gi = (jnp.dot(sig, params["wi_sig"], preferred_element_type=jnp.float32)
          + jnp.dot(act, params["wi_act"], preferred_element_type=jnp.float32)
          + params["b"][0:1, :])
    gh = jnp.dot(h_b, params["wh"], preferred_element_type=jnp.float32)
    b_hn = params["b"][1:2, 2 * H:]

    r = jax.nn.sigmoid(gi[:, :H] + gh[:, :H])
    z = jax.nn.sigmoid(gi[:, H:2 * H] + gh[:, H:2 * H])
    n = jnp.tanh(gi[:, 2 * H:] + r * (gh[:, 2 * H:] + b_hn))
    h_new = (1.0 - z) * n + z * h_f32

    logits = jnp.dot(h_new.astype(jnp.bfloat16), params["wp"],
                     preferred_element_type=jnp.float32) + params["bp"]
    probs = jax.nn.softmax(logits, axis=1)
    return probs, h_new


# --------------------------------- main ---------------------------------------
if __name__ == "__main__":
    num_agents = 4
    hidden_size = 32
    action_size = 2
    batch = 8                      # all agents / envs stacked -> fills the 8 sublanes
    signal_dim = num_agents        # per-agent signal/observation features

    key = jax.random.PRNGKey(0)
    k_sig, k_act, k_par = jax.random.split(key, 3)

    signal = jax.random.normal(k_sig, (batch, signal_dim), jnp.float32)
    actions = jax.random.normal(k_act, (batch, num_agents), jnp.float32)
    hidden = init_hidden(batch, hidden_size)
    params = init_params(k_par, signal_dim, num_agents, hidden_size, action_size)

    probs, h_new = decentralized_actor_forward(signal, actions, hidden, params)
    jax.block_until_ready((probs, h_new))

    # sanity: shapes, softmax rows ~sum to 1 (approx reciprocal), matches reference
    assert probs.shape == (batch, action_size)
    assert h_new.shape == (batch, hidden_size)
    assert jnp.allclose(jnp.sum(probs, axis=1), 1.0, atol=1e-2)

    ref_probs, ref_h = reference_forward(signal, actions, hidden, params, hidden_size)
    assert jnp.allclose(probs, ref_probs, atol=2e-2, rtol=2e-2)
    assert jnp.allclose(h_new, ref_h, atol=2e-2, rtol=2e-2)

    # TODO(synk): MultiAgentRNN source not provided; assumed GRUCell over
    # concat([signal, actions]) per the standard CTDE reference implementation.
    print("KERNEL_OK")
</pallas_src>

<mosaic_0001>
module attributes {stable_mosaic.version = 11 : i64} {
  func.func @actor_kernel(%arg0: memref<8x4xf32, #tpu.memory_space<vmem>>, %arg1: memref<8x4xf32, #tpu.memory_space<vmem>>, %arg2: memref<8x32xf32, #tpu.memory_space<vmem>>, %arg3: memref<4x96xbf16, #tpu.memory_space<vmem>>, %arg4: memref<4x96xbf16, #tpu.memory_space<vmem>>, %arg5: memref<32x96xbf16, #tpu.memory_space<vmem>>, %arg6: memref<2x96xf32, #tpu.memory_space<vmem>>, %arg7: memref<32x2xbf16, #tpu.memory_space<vmem>>, %arg8: memref<1x2xf32, #tpu.memory_space<vmem>>, %arg9: memref<8x2xf32, #tpu.memory_space<vmem>>, %arg10: memref<8x32xf32, #tpu.memory_space<vmem>>) attributes {dimension_semantics = [], scalar_prefetch = 0 : i64, scratch_operands = 0 : i64, tpu.core_type = #tpu.core_type<tc>} {
    %c0 = arith.constant 0 : index
    %c0_0 = arith.constant 0 : index
    %0 = vector.load %arg2[%c0, %c0_0] : memref<8x32xf32, #tpu.memory_space<vmem>>, vector<8x32xf32>
    %c0_1 = arith.constant 0 : index
    %c0_2 = arith.constant 0 : index
    %1 = vector.load %arg0[%c0_1, %c0_2] : memref<8x4xf32, #tpu.memory_space<vmem>>, vector<8x4xf32>
    %2 = arith.truncf %1 : vector<8x4xf32> to vector<8x4xbf16>
    %c0_3 = arith.constant 0 : index
    %c0_4 = arith.constant 0 : index
    %3 = vector.load %arg1[%c0_3, %c0_4] : memref<8x4xf32, #tpu.memory_space<vmem>>, vector<8x4xf32>
    %4 = arith.truncf %3 : vector<8x4xf32> to vector<8x4xbf16>
    %5 = arith.truncf %0 : vector<8x32xf32> to vector<8x32xbf16>
    %c0_5 = arith.constant 0 : index
    %c0_6 = arith.constant 0 : index
    %6 = vector.load %arg3[%c0_5, %c0_6] : memref<4x96xbf16, #tpu.memory_space<vmem>>, vector<4x96xbf16>
    %cst = arith.constant dense<0.000000e+00> : vector<8x96xf32>
    %7 = tpu.matmul %2, %6, %cst {dimension_numbers = #tpu.dot_dimension_numbers<[1], [0], [0], [1], [0, 0, 1, 1], [], []>} : vector<8x4xbf16>, vector<4x96xbf16>, vector<8x96xf32> -> vector<8x96xf32>
    %c0_7 = arith.constant 0 : index
    %c0_8 = arith.constant 0 : index
    %8 = vector.load %arg4[%c0_7, %c0_8] : memref<4x96xbf16, #tpu.memory_space<vmem>>, vector<4x96xbf16>
    %cst_9 = arith.constant dense<0.000000e+00> : vector<8x96xf32>
    %9 = tpu.matmul %4, %8, %cst_9 {dimension_numbers = #tpu.dot_dimension_numbers<[1], [0], [0], [1], [0, 0, 1, 1], [], []>} : vector<8x4xbf16>, vector<4x96xbf16>, vector<8x96xf32> -> vector<8x96xf32>
    %10 = arith.addf %7, %9 : vector<8x96xf32>
    %c0_10 = arith.constant 0 : index
    %c0_11 = arith.constant 0 : index
    %11 = vector.load %arg6[%c0_10, %c0_11] : memref<2x96xf32, #tpu.memory_space<vmem>>, vector<1x96xf32>
    %12 = vector.broadcast %11 : vector<1x96xf32> to vector<8x96xf32>
    %13 = arith.addf %10, %12 : vector<8x96xf32>
    %c0_12 = arith.constant 0 : index
    %c0_13 = arith.constant 0 : index
    %14 = vector.load %arg5[%c0_12, %c0_13] : memref<32x96xbf16, #tpu.memory_space<vmem>>, vector<32x96xbf16>
    %cst_14 = arith.constant dense<0.000000e+00> : vector<8x96xf32>
    %15 = tpu.matmul %5, %14, %cst_14 {dimension_numbers = #tpu.dot_dimension_numbers<[1], [0], [0], [1], [0, 0, 1, 1], [], []>} : vector<8x32xbf16>, vector<32x96xbf16>, vector<8x96xf32> -> vector<8x96xf32>
    %c1 = arith.constant 1 : index
    %c64 = arith.constant 64 : index
    %16 = vector.load %arg6[%c1, %c64] : memref<2x96xf32, #tpu.memory_space<vmem>>, vector<1x32xf32>
    %17 = vector.extract_strided_slice %13 {offsets = [0, 0], sizes = [8, 32], strides = [1, 1]} : vector<8x96xf32> to vector<8x32xf32>
    %18 = vector.extract_strided_slice %15 {offsets = [0, 0], sizes = [8, 32], strides = [1, 1]} : vector<8x96xf32> to vector<8x32xf32>
    %19 = arith.addf %17, %18 : vector<8x32xf32>
    %20 = arith.negf %19 : vector<8x32xf32>
    %21 = math.exp %20 : vector<8x32xf32>
    %cst_15 = arith.constant 1.000000e+00 : f32
    %22 = vector.broadcast %cst_15 : f32 to vector<8x32xf32>
    %23 = arith.addf %22, %21 : vector<8x32xf32>
    %24 = arith.divf %22, %23 : vector<8x32xf32>
    %25 = vector.extract_strided_slice %13 {offsets = [0, 32], sizes = [8, 32], strides = [1, 1]} : vector<8x96xf32> to vector<8x32xf32>
    %26 = vector.extract_strided_slice %15 {offsets = [0, 32], sizes = [8, 32], strides = [1, 1]} : vector<8x96xf32> to vector<8x32xf32>
    %27 = arith.addf %25, %26 : vector<8x32xf32>
    %28 = arith.negf %27 : vector<8x32xf32>
    %29 = math.exp %28 : vector<8x32xf32>
    %cst_16 = arith.constant 1.000000e+00 : f32
    %30 = vector.broadcast %cst_16 : f32 to vector<8x32xf32>
    %31 = arith.addf %30, %29 : vector<8x32xf32>
    %32 = arith.divf %30, %31 : vector<8x32xf32>
    %33 = vector.extract_strided_slice %13 {offsets = [0, 64], sizes = [8, 32], strides = [1, 1]} : vector<8x96xf32> to vector<8x32xf32>
    %34 = vector.extract_strided_slice %15 {offsets = [0, 64], sizes = [8, 32], strides = [1, 1]} : vector<8x96xf32> to vector<8x32xf32>
    %35 = vector.broadcast %16 : vector<1x32xf32> to vector<8x32xf32>
    %36 = arith.addf %34, %35 : vector<8x32xf32>
    %37 = arith.mulf %24, %36 : vector<8x32xf32>
    %38 = arith.addf %33, %37 : vector<8x32xf32>
    %39 = math.tanh %38 : vector<8x32xf32>
    %cst_17 = arith.constant 1.000000e+00 : f32
    %40 = vector.broadcast %cst_17 : f32 to vector<8x32xf32>
    %41 = arith.subf %40, %32 : vector<8x32xf32>
    %42 = arith.mulf %41, %39 : vector<8x32xf32>
    %43 = arith.mulf %32, %0 : vector<8x32xf32>
    %44 = arith.addf %42, %43 : vector<8x32xf32>
    %45 = arith.truncf %44 : vector<8x32xf32> to vector<8x32xbf16>
    %c0_18 = arith.constant 0 : index
    %c0_19 = arith.constant 0 : index
    %46 = vector.load %arg7[%c0_18, %c0_19] : memref<32x2xbf16, #tpu.memory_space<vmem>>, vector<32x2xbf16>
    %cst_20 = arith.constant dense<0.000000e+00> : vector<8x2xf32>
    %47 = tpu.matmul %45, %46, %cst_20 {dimension_numbers = #tpu.dot_dimension_numbers<[1], [0], [0], [1], [0, 0, 1, 1], [], []>} : vector<8x32xbf16>, vector<32x2xbf16>, vector<8x2xf32> -> vector<8x2xf32>
    %c0_21 = arith.constant 0 : index
    %c0_22 = arith.constant 0 : index
    %48 = vector.load %arg8[%c0_21, %c0_22] : memref<1x2xf32, #tpu.memory_space<vmem>>, vector<1x2xf32>
    %49 = vector.broadcast %48 : vector<1x2xf32> to vector<8x2xf32>
    %50 = arith.addf %47, %49 : vector<8x2xf32>
    %cst_23 = arith.constant dense<0xFF800000> : vector<8xf32>
    %51 = vector.multi_reduction <maximumf>, %50, %cst_23 [1] : vector<8x2xf32> to vector<8xf32>
    %52 = vector.shape_cast %51 : vector<8xf32> to vector<8x1xf32>
    %53 = vector.broadcast %52 : vector<8x1xf32> to vector<8x2xf32>
    %54 = arith.subf %50, %53 : vector<8x2xf32>
    %55 = math.exp %54 : vector<8x2xf32>
    %cst_24 = arith.constant dense<0.000000e+00> : vector<8xf32>
    %56 = vector.multi_reduction <add>, %55, %cst_24 [1] : vector<8x2xf32> to vector<8xf32>
    %57 = vector.shape_cast %56 : vector<8xf32> to vector<8x1xf32>
    %58 = tpu.reciprocal %57 {approx = true} : vector<8x1xf32> -> vector<8x1xf32>
    %59 = vector.broadcast %58 : vector<8x1xf32> to vector<8x2xf32>
    %60 = arith.mulf %55, %59 : vector<8x2xf32>
    %c0_25 = arith.constant 0 : index
    %c0_26 = arith.constant 0 : index
    %61 = vector.load %arg9[%c0_25, %c0_26] : memref<8x2xf32, #tpu.memory_space<vmem>>, vector<8x2xf32>
    tpu.vector_store %arg9[%c0_25, %c0_26], %60 {strides = array<i32>} : memref<8x2xf32, #tpu.memory_space<vmem>>, vector<8x2xf32>,
    %c0_27 = arith.constant 0 : index
    %c0_28 = arith.constant 0 : index
    %62 = vector.load %arg10[%c0_27, %c0_28] : memref<8x32xf32, #tpu.memory_space<vmem>>, vector<8x32xf32>
    tpu.vector_store %arg10[%c0_27, %c0_28], %44 {strides = array<i32>} : memref<8x32xf32, #tpu.memory_space<vmem>>, vector<8x32xf32>,
    return
  }
}

</mosaic_0001>

<bundles_post_ra>
// kernel: tpu_custom_call.1
= control target key start
LH: loop header
LB: loop body
LE: loop exit
PB: predicated region body
PF: predicated region fallthrough
CT: control target
= control target key end

     0   :  { %vm48_vm0 = vcmask 1041408   ;;  %v438_v2 = vmov 0.0   ;;  %vm44_vm1 = vcmask 31744   ;;  %vm439_vm2 = vmmov 0   ;;  %s560_s0 = inlined_call_operand.vmem [shape: f32[8,4], index: 0, kind: input, shape index: {}]   ;;  %s561_s1 = inlined_call_operand.vmem [shape: f32[8,4], index: 1, kind: input, shape index: {}]   ;;  %s562_s2 = inlined_call_operand.vmem [shape: f32[8,32], index: 2, kind: input, shape index: {}]   ;;  %s563_s3 = inlined_call_operand.vmem [shape: bf16[4,96], index: 3, kind: input, shape index: {}]   ;;  %s564_s4 = inlined_call_operand.vmem [shape: bf16[4,96], index: 4, kind: input, shape index: {}]   ;;  %s565_s5 = inlined_call_operand.vmem [shape: bf16[32,96], index: 5, kind: input, shape index: {}]   ;;  %s566_s6 = inlined_call_operand.vmem [shape: f32[2,96], index: 6, kind: input, shape index: {}]   ;;  %s567_s7 = inlined_call_operand.vmem [shape: bf16[32,2], index: 7, kind: input, shape index: {}]   ;;  %s568_s8 = inlined_call_operand.vmem [shape: f32[1,2], index: 8, kind: input, shape index: {}]   ;;  %s569_s9 = inlined_call_operand.vmem [shape: f32[8,2], index: 9, kind: output, shape index: {0}]   ;;  %s570_s10 = inlined_call_operand.hbm [shape: f32[8,32], index: 10, kind: output, shape index: {1}]  }
   0x1   :  { %v43_v0 = vld [vmem:[%s564_s4] sm:$0x3]  ;;  %368 = vmatprep.subr.bf16.mxu0 %v438_v2  ;;  %374 = vmatprep.subr.bf16.mxu1 %v438_v2  ;;  %v402_v9 = vld [vmem:[%s565_s5 + $0x8] sm:$0xff]  }
   0x2   :  { %v42_v1 = vld [vmem:[%s563_s3] sm:$0x3]  ;;  %v50_v3 = vsel %vm48_vm0, %v43_v0, 0  ;;  %370 = vmatprep.mubr.msk.bf16.mxu0 %vm439_vm2, %v438_v2  ;;  %376 = vmatprep.mubr.msk.bf16.mxu1 %vm439_vm2, %v438_v2 }
   0x3   :  { %v96_v4 = vsel %vm48_vm0, %v42_v1, 0  ;;  %v39_v5 = vld [vmem:[%s561_s1] sm:$0xff]  ;;  %369 = vmatpush3.bf16.msra.mxu0 %v50_v3 }
   0x4   :  { %v37_v6 = vld [vmem:[%s560_s0] sm:$0xff]  ;;  %375 = vmatpush3.bf16.msra.mxu1 %v96_v4  ;;  %v40_v7 = vpack.c.bf16 %v39_v5, %v39_v5  ;;  %380 = vmatprep.subr.bf16.mxu0 %v438_v2 }
   0x5   :  { %v38_v8 = vpack.c.bf16 %v37_v6, %v37_v6  ;;  %388 = vmatprep.subr.bf16.mxu1 %v438_v2 }
   0x6   :  { %371 = vmatmul.mubr.msk.bf16.vlgmr.msra.gmra.mxu0 %vm44_vm1, %v40_v7 }
   0x7   :  { %377 = vmatmul.mubr.msk.bf16.vlgmr.msra.gmra.mxu1 %vm44_vm1, %v38_v8 }
   0x8   :  { %16 = vsyncpa [#allocation3], 0  ;;  %381 = vmatpush3.bf16.msra.mxu0 %v402_v9  ;;  %v403_v10 = vld [vmem:[%s565_s5] sm:$0xff]   ;;  %384 = vmatprep.mubr.msk.bf16.mxu0 %vm439_vm2, %v438_v2  ;;  %vm160_vm3 = vcmask 261120   ;;  %v404_v39 = vld [vmem:[%s567_s7 + $0x8] sm:$0xff]   ;;  %s441_s29 = smov 96  }
   0x9   :  { %v36_v11 = vld [vmem:[%s562_s2] sm:$0xff]  ;;  %382 = vmatprep.subr.bf16.mxu0 %v438_v2  ;;  %392 = vmatprep.mubr.msk.bf16.mxu1 %vm439_vm2, %v438_v2  ;;  %s440_s2 = smov 64   ;;  %s442_s30 = smov 32   ;;  %vm310_vm4 = vcmask 15360  }
   0xa   :  { %v41_v12 = vpack.c.bf16 %v36_v11, %v36_v11  ;;  %v353_v21 = vld [vmem:[%s566_s6 + $0x1] ss:$0 sm:$0xff]  ;;  %v348_v28 = vld [vmem:[%s566_s6] ss:$0 sm:$0xff]  ;;  %389 = vmatpush3.bf16.msra.mxu1 %v404_v39 }
   0xb   :  { %v405_v41 = vld [vmem:[%s567_s7] sm:$0xff]   ;;  %390 = vmatprep.subr.bf16.mxu1 %v438_v2 }
   0xc   :  { %383 = vmatpush3.bf16.msra.mxu0 %v403_v10  ;;  %v354_v50 = vld [vmem:[%s568_s8] ss:$0 sm:$0xff]  ;;  %s443_s8 = smov [#allocation2]  }
   0xd   :  { %s336_s12 = sshll.u32 %s443_s8, 4  ;;  %s337_s12 = int_to_ptr.vmem [resolvable:$true] %s336_s12 }
   0xe   :  { %391 = vmatpush3.bf16.msra.mxu1 %v405_v41  ;;  %s416_s13 = scalar_lea.vmem %s337_s12, 128  ;;  %p421_p1 = scmp.lt.s32.totalorder %s337_s12, %s337_s12 }
   0xf   :  { %385 = vmatmul.mubr.msk.bf16.vlgmr.msra.gmra.mxu0 %vm160_vm3, %v41_v12  ;;  %p417_p0 = scmp.ne.s32.totalorder %s337_s12, %s416_s13  ;;  %p422_p2 = scmp.lt.s32.totalorder %s416_s13, %s416_s13 }
  0x11   :  { %p423_p3 = por %p422_p2, %p421_p1 }
  0x13   :  { %p424_p4 = pnand %p423_p3, %p417_p0 }
  0xc6   :  { %v86_v13 = vpop.f32.mrf.mxu0 }
  0xc7   :  { %v132_v14 = vpop.f32.mrf.mxu1 }
  0xc8   :  { %v133_v15 = vadd.f32 %v132_v14, %v86_v13  ;;  %v372_v16 = vpop.f32.mrf.mxu0 }
  0xc9   :  { %v378_v17 = vpop.f32.mrf.mxu1 }
  0xca   :  { %v89_v18 = vpop.f32.mrf.mxu0  ;;  %v143_v29 = vadd.f32 %v348_v28, %v133_v15 }
  0xcb   :  { %v135_v19 = vpop.f32.mrf.mxu1 }
  0xcc   :  { %v373_v20 = vpop.f32.mrf.mxu0 }
  0xcd   :  { %v379_v22 = vpop.f32.mrf.mxu1 }
  0xcf   :  { %v198_v23 = vpop.f32.mrf.mxu0 }
  0xd0   :  { %v216_v24 = vadd.f32 %v353_v21, %v198_v23  ;;  %v205_v30 = vadd.f32 %v198_v23, %v143_v29 }
  0xd1   :  { %v386_v25 = vpop.f32.mrf.mxu0 }
  0xd2   :  { %218 = vrot.lane.b32.xlu0 %v216_v24, %s440_s2  ;;  %v352_v31 = vmul.f32 -1.442695, %v205_v30 }
  0xd3   :  { %v201_v26 = vpop.f32.mrf.mxu0 }
  0xd4   :  { %406 = vpow2.f32 %v352_v31 }
  0xd5   :  { %v387_v27 = vpop.f32.mrf.mxu0 }
  0xe1   :  { %v407_v32 = vpop.eup %406 }
  0xe2   :  { %v209_v33 = vadd.f32 1.0, %v407_v32 }
  0xe4   :  { %408 = vrcp.f32 %v209_v33 }
  0xf1   :  { %v409_v34 = vpop.eup %408 }
  0xf2   :  { %v228_v43 = vsub.f32 1.0, %v409_v34 }
 0x144   :  { %v219_v35 = vpop.permute.xlu0 %218 }
 0x145   :  { %v221_v36 = vmul.f32 %v409_v34, %v219_v35 }
 0x147   :  { %223 = vrot.lane.b32.xlu0 %v221_v36, %s440_s2 }
 0x1b9   :  { %v224_v37 = vpop.permute.xlu0 %223 }
 0x1ba   :  { %v226_v38 = vadd.f32 %v224_v37, %v143_v29 }
 0x1bc   :  { %410 = vtanh.f32 %v226_v38 }
 0x1c9   :  { %v411_v40 = vpop.eup %410 }
 0x1ca   :  { %230 = vrot.lane.b32.xlu1 %v411_v40, %s441_s29 }
 0x1ce   :  { %235 = vrot.lane.b32.xlu1 %v36_v11, %s442_s30 }
 0x23c   :  { %v231_v42 = vpop.permute.xlu1 %230 }
 0x23d   :  { %v233_v45 = vmul.f32 %v231_v42, %v228_v43 }
 0x240   :  { %v236_v44 = vpop.permute.xlu1 %235 }
 0x241   :  { %v238_v46 = vmul.f32 %v409_v34, %v236_v44 }
 0x243   :  { %v239_v47 = vadd.f32 %v238_v46, %v233_v45 }
 0x245   :  { %v240_v48 = vpack.c.bf16 %v239_v47, %v239_v47 }
 0x247   :  { %253 = vrot.lane.b32.xlu0 %v240_v48, %s441_s29 }
 0x2b9   :  { %v254_v49 = vpop.permute.xlu0 %253 }
 0x2ba   :  { %393 = vmatmul.mubr.msk.bf16.vlgmr.msra.gmra.mxu1 %vm160_vm3, %v254_v49 }
 0x37a   :  { %v304_v51 = vpop.f32.mrf.mxu1 }
 0x37b   :  { %v305_v52 = vadd.f32 %v354_v50, %v304_v51 }
 0x37c   :  { %v394_v53 = vpop.f32.mrf.mxu1 }
 0x37d   :  { %v311_v54 = vsel %vm310_vm4, %v305_v52, -inf }
 0x37e   :  { %312 = vmax.xlane.f32.xlu1 %v311_v54  ;;  %v307_v55 = vpop.f32.mrf.mxu1 }
 0x380   :  { %v395_v56 = vpop.f32.mrf.mxu1 }
 0x407   :  { %v313_v57 = vpop.xlane.xlu1 %312 }
 0x408   :  { %v314_v58 = vsub.f32 %v305_v52, %v313_v57 }
 0x40a   :  { %v315_v59 = vmul.f32 1.442695, %v314_v58 }
 0x40c   :  { %412 = vpow2.f32 %v315_v59 }
 0x419   :  { %v413_v60 = vpop.eup %412 }
 0x41a   :  { %v317_v61 = vsel %vm310_vm4, %v413_v60, 0.0 }
 0x41b   :  { %318 = vadd.xlane.f32.xlu0 %v317_v61 }
 0x431   :  { %324 = vrot.lane.b32.xlu0 %v239_v47, %s441_s29 }
 0x4a4   :  { %v319_v62 = vpop.xlane.xlu0 %318 }
 0x4a5   :  { %414 = vrcp.f32 %v319_v62 }
 0x4a8   :  { %v325_v63 = vpop.permute.xlu0 %324 }
 0x4a9   :  { %327 = vst.msk [vmem:[#allocation2] sm:$0xff] %vm160_vm3, %v325_v63 }
 0x4aa   :  { %427 = shalt.err (!%p424_p4)
}
 0x4ab   :  { %339 = dma.vmem_to_hbm [thread:$0]  %s337_s12, 128, %s570_s10, [#allocation3]  }
 0x4b2   :  { %v415_v0 = vpop.eup %414 }
 0x4b3   :  { %v321_v1 = vmul.f32 %v415_v0, %v413_v60 }
 0x4b5   :  { %322 = vst.msk [vmem:[%s569_s9] sm:$0xff] %vm310_vm4, %v321_v1 }
 0x4b6   :  { %436 = dma.done.wait [#allocation3], 128  }
 0x4b7   :  { %437 = vsyncadd [#allocation3], 4294967168 }
 0x4b8   :  { %345 = vsyncpa [#allocation3], 1 }

</bundles_post_ra>
